<compile_context>
chip_gen: v7x
topology: tpu7x:2x2x1
jax: 0.10.0
libtpu: 0.0.40
codegen_flags: <defaults>
</compile_context>

<pallas_src>
import jax
import jax.numpy as jnp
from jax.experimental import pallas as pl
from jax.experimental.pallas import tpu as pltpu

_NUM_CORES = 2                          # leading "parallel" grid axis
_TARGET_BLOCK_BYTES = 2 * 1024 * 1024   # ~2 MiB per input block (safe on all gens)
_MAX_TC = 32768                         # cap on column tile (lanes)
_MAX_TR = 512                           # cap on row tile (bounds in-kernel unroll)


def _round_up(x, m):
    return -(-x // m) * m


def get_solid_angle_weights(H, W):
    """Per-pixel solid angle of an (H, W) equirectangular image, float32."""
    # TODO(synk): the original repo's get_solid_angle_weights was not included
    # in the spec; this uses the standard dOmega = sin(theta)*dtheta*dphi form.
    theta = (jnp.arange(H, dtype=jnp.float32) + 0.5) * (jnp.pi / H)
    w_row = jnp.sin(theta) * (jnp.pi / H) * (2.0 * jnp.pi / W)
    return jnp.broadcast_to(w_row[:, None], (H, W))


def l1_loss_solid_angle(prediction, target):
    """sum(|weight * (target - prediction)|) for NCHW inputs."""
    assert prediction.shape == target.shape
    B, C, H, W = prediction.shape
    R, N = B * C, H * W
    itemsize = jnp.dtype(prediction.dtype).itemsize
    sub = max(8, 32 // itemsize)          # native sublane packing for the dtype

    # ---- row tiling (second-minor dim = images) --------------------------
    if R <= _MAX_TR:
        tr, n_rb, Rrows = R, 1, R         # single row block: full-dim, no pad
    else:
        n_rb = -(-R // _MAX_TR)
        tr = _round_up(-(-R // n_rb), sub)
        n_rb = -(-R // tr)
        Rrows = tr * n_rb

    # ---- column tiling (minor dim = pixels of one image, lane-dense) -----
    Npad = _round_up(N, 128)
    tc_des = _TARGET_BLOCK_BYTES // (max(tr, 8) * itemsize)
    tc_des = max(128, min(tc_des, _MAX_TC) // 128 * 128)
    n_cb = -(-Npad // tc_des)
    num_cores = _NUM_CORES if n_cb >= _NUM_CORES else 1
    n_cb = _round_up(n_cb, num_cores)
    tc = min(Npad, _round_up(-(-Npad // n_cb), 128))
    n_cb = _round_up(-(-Npad // tc), num_cores)
    Ncols = tc * n_cb
    col_steps = n_cb // num_cores
    # TODO(synk): when there is a single column block but many row blocks,
    # the core split could be moved to the row axis instead.

    # ---- build inputs -----------------------------------------------------
    p2 = prediction.reshape(R, N)
    t2 = target.reshape(R, N)
    if (Rrows > R) or (Ncols > N):
        # zero-padded elements give diff == 0 -> contribute exactly 0
        pad = ((0, Rrows - R), (0, Ncols - N))
        p2 = jnp.pad(p2, pad)
        t2 = jnp.pad(t2, pad)

    w_flat = get_solid_angle_weights(H, W).reshape(1, N).astype(jnp.float32)
    if Ncols > N:
        w_flat = jnp.pad(w_flat, ((0, 0), (0, Ncols - N)))   # zero weight on pad

    n_full = tr // sub
    rem = tr - n_full * sub

    def kernel(w_ref, p_ref, t_ref, out_ref, acc_ref):
        j = pl.program_id(1)              # column-block step of this core (outer)
        i = pl.program_id(2)              # row-block step (inner)

        @pl.when((j == 0) & (i == 0))
        def _init():
            acc_ref[...] = jnp.zeros_like(acc_ref)

        w = w_ref[...]                    # (1, tc) f32, broadcast over rows

        def weighted_abs(r0, nr):
            p = p_ref[r0:r0 + nr, :].astype(jnp.float32)
            t = t_ref[r0:r0 + nr, :].astype(jnp.float32)
            return jnp.abs(w * (t - p))

        # Fold the (tr, tc) tile into the small (sub, tc) accumulator in
        # sublane-packed chunks (pure VPU work; no per-step XLU reduce).
        for b in range(n_full):
            acc_ref[...] += weighted_abs(b * sub, sub)
        if rem:
            acc_ref[0:rem, :] += weighted_abs(n_full * sub, rem)

        @pl.when((j == pl.num_programs(1) - 1) & (i == pl.num_programs(2) - 1))
        def _finish():
            # one cross-sublane reduce per core, only on its final step
            out_ref[...] = jnp.sum(acc_ref[...], axis=0, keepdims=True)[None]

    data_spec = pl.BlockSpec((tr, tc), lambda c, j, i: (i, c * col_steps + j))
    wgt_spec = pl.BlockSpec((1, tc), lambda c, j, i: (0, c * col_steps + j))
    out_spec = pl.BlockSpec((1, 1, tc), lambda c, j, i: (c, 0, 0))

    partials = pl.pallas_call(
        kernel,
        out_shape=jax.ShapeDtypeStruct((num_cores, 1, tc), jnp.float32),
        grid_spec=pltpu.PrefetchScalarGridSpec(
            num_scalar_prefetch=0,
            grid=(num_cores, col_steps, n_rb),
            in_specs=[wgt_spec, data_spec, data_spec],
            out_specs=out_spec,
            scratch_shapes=[pltpu.VMEM((sub, tc), jnp.float32)],
        ),
        compiler_params=pltpu.CompilerParams(
            # TODO(synk): on v7x, verify the leading "parallel" axis actually
            # engages both TensorCores (else switch it to pltpu.CORE_PARALLEL).
            dimension_semantics=("parallel", "arbitrary", "arbitrary"),
            vmem_limit_bytes=32 * 1024 * 1024,
        ),
    )(w_flat, p2, t2)

    return jnp.sum(partials)


if __name__ == "__main__":
    key = jax.random.PRNGKey(0)
    k1, k2 = jax.random.split(key)

    B, C, H, W = 2, 4, 16, 16
    prediction = jax.random.normal(k1, (B, C, H, W), dtype=jnp.float32)
    target = jax.random.normal(k2, (B, C, H, W), dtype=jnp.float32)

    loss = l1_loss_solid_angle(prediction, target)
    loss = jax.block_until_ready(loss)

    # reference in plain JAX (full broadcast weight, like the PyTorch module)
    w_img = get_solid_angle_weights(H, W)
    ref = jnp.sum(jnp.abs(w_img[None, None, :, :] * (target - prediction)))
    assert jnp.allclose(loss, ref, rtol=1e-5, atol=1e-5), (loss, ref)

    print("KERNEL_OK")
</pallas_src>

<mosaic_0001>
module attributes {stable_mosaic.version = 11 : i64} {
  func.func @kernel(%arg0: i32, %arg1: i32, %arg2: i32, %arg3: memref<1x256xf32, #tpu.memory_space<vmem>>, %arg4: memref<8x256xf32, #tpu.memory_space<vmem>>, %arg5: memref<8x256xf32, #tpu.memory_space<vmem>>, %arg6: memref<1x1x256xf32, #tpu.memory_space<vmem>>, %arg7: memref<8x256xf32, #tpu.memory_space<vmem>>) attributes {dimension_semantics = [#tpu.dimension_semantics<parallel>, #tpu.dimension_semantics<arbitrary>, #tpu.dimension_semantics<arbitrary>], iteration_bounds = array<i64: 1, 1, 1>, scalar_prefetch = 0 : i64, scratch_operands = 1 : i64, tpu.core_type = #tpu.core_type<tc>, window_params = [{transform_indices = @transform_0, window_bounds = array<i64: 1, 256>}, {transform_indices = @transform_1, window_bounds = array<i64: 8, 256>}, {transform_indices = @transform_2, window_bounds = array<i64: 8, 256>}, {transform_indices = @transform_3, window_bounds = array<i64: 1, 1, 256>}]} {
    %c0_i32 = arith.constant 0 : i32
    %0 = arith.cmpi eq, %arg1, %c0_i32 : i32
    %c0_i32_0 = arith.constant 0 : i32
    %1 = arith.cmpi eq, %arg2, %c0_i32_0 : i32
    %2 = arith.andi %0, %1 : i1
    %3 = arith.extui %2 : i1 to i32
    %c0_i32_1 = arith.constant 0 : i32
    %4 = arith.cmpi ne, %3, %c0_i32_1 : i32
    scf.if %4 {
      %cst = arith.constant 0.000000e+00 : f32
      %20 = vector.broadcast %cst : f32 to vector<8x256xf32>
      %c0_14 = arith.constant 0 : index
      %c0_15 = arith.constant 0 : index
      %21 = vector.load %arg7[%c0_14, %c0_15] : memref<8x256xf32, #tpu.memory_space<vmem>>, vector<8x256xf32>
      tpu.vector_store %arg7[%c0_14, %c0_15], %20 {strides = array<i32>} : memref<8x256xf32, #tpu.memory_space<vmem>>, vector<8x256xf32>,
    } else {
    }
    %c0 = arith.constant 0 : index
    %c0_2 = arith.constant 0 : index
    %5 = vector.load %arg3[%c0, %c0_2] : memref<1x256xf32, #tpu.memory_space<vmem>>, vector<1x256xf32>
    %c0_3 = arith.constant 0 : index
    %c0_4 = arith.constant 0 : index
    %6 = vector.load %arg7[%c0_3, %c0_4] : memref<8x256xf32, #tpu.memory_space<vmem>>, vector<8x256xf32>
    %c0_5 = arith.constant 0 : index
    %c0_6 = arith.constant 0 : index
    %7 = vector.load %arg4[%c0_5, %c0_6] : memref<8x256xf32, #tpu.memory_space<vmem>>, vector<8x256xf32>
    %c0_7 = arith.constant 0 : index
    %c0_8 = arith.constant 0 : index
    %8 = vector.load %arg5[%c0_7, %c0_8] : memref<8x256xf32, #tpu.memory_space<vmem>>, vector<8x256xf32>
    %9 = arith.subf %8, %7 : vector<8x256xf32>
    %10 = vector.broadcast %5 : vector<1x256xf32> to vector<8x256xf32>
    %11 = arith.mulf %10, %9 : vector<8x256xf32>
    %12 = math.absf %11 : vector<8x256xf32>
    %13 = arith.addf %6, %12 : vector<8x256xf32>
    %c0_9 = arith.constant 0 : index
    %c0_10 = arith.constant 0 : index
    %14 = vector.load %arg7[%c0_9, %c0_10] : memref<8x256xf32, #tpu.memory_space<vmem>>, vector<8x256xf32>
    tpu.vector_store %arg7[%c0_9, %c0_10], %13 {strides = array<i32>} : memref<8x256xf32, #tpu.memory_space<vmem>>, vector<8x256xf32>,
    %c0_i32_11 = arith.constant 0 : i32
    %15 = arith.cmpi eq, %arg1, %c0_i32_11 : i32
    %c0_i32_12 = arith.constant 0 : i32
    %16 = arith.cmpi eq, %arg2, %c0_i32_12 : i32
    %17 = arith.andi %15, %16 : i1
    %18 = arith.extui %17 : i1 to i32
    %c0_i32_13 = arith.constant 0 : i32
    %19 = arith.cmpi ne, %18, %c0_i32_13 : i32
    scf.if %19 {
      %c0_14 = arith.constant 0 : index
      %c0_15 = arith.constant 0 : index
      %20 = vector.load %arg7[%c0_14, %c0_15] : memref<8x256xf32, #tpu.memory_space<vmem>>, vector<8x256xf32>
      %cst = arith.constant dense<0.000000e+00> : vector<256xf32>
      %21 = vector.multi_reduction <add>, %20, %cst [0] : vector<8x256xf32> to vector<256xf32>
      %22 = vector.shape_cast %21 : vector<256xf32> to vector<1x256xf32>
      %23 = vector.shape_cast %22 : vector<1x256xf32> to vector<1x1x256xf32>
      %c0_16 = arith.constant 0 : index
      %c0_17 = arith.constant 0 : index
      %c0_18 = arith.constant 0 : index
      %24 = vector.load %arg6[%c0_16, %c0_17, %c0_18] : memref<1x1x256xf32, #tpu.memory_space<vmem>>, vector<1x1x256xf32>
      tpu.vector_store %arg6[%c0_16, %c0_17, %c0_18], %23 {strides = array<i32>} : memref<1x1x256xf32, #tpu.memory_space<vmem>>, vector<1x1x256xf32>,
    } else {
    }
    return
  }
  func.func @transform_0(%arg0: i32, %arg1: i32, %arg2: i32) -> (i32, i32) {
    %c1_i32 = arith.constant 1 : i32
    %0 = arith.muli %arg0, %c1_i32 : i32
    %1 = arith.addi %0, %arg1 : i32
    %c0_i32 = arith.constant 0 : i32
    %c0_i32_0 = arith.constant 0 : i32
    return %c0_i32, %1 : i32, i32
  }
  func.func @transform_1(%arg0: i32, %arg1: i32, %arg2: i32) -> (i32, i32) {
    %c1_i32 = arith.constant 1 : i32
    %0 = arith.muli %arg0, %c1_i32 : i32
    %1 = arith.addi %0, %arg1 : i32
    %c0_i32 = arith.constant 0 : i32
    return %arg2, %1 : i32, i32
  }
  func.func @transform_2(%arg0: i32, %arg1: i32, %arg2: i32) -> (i32, i32) {
    %c1_i32 = arith.constant 1 : i32
    %0 = arith.muli %arg0, %c1_i32 : i32
    %1 = arith.addi %0, %arg1 : i32
    %c0_i32 = arith.constant 0 : i32
    return %arg2, %1 : i32, i32
  }
  func.func @transform_3(%arg0: i32, %arg1: i32, %arg2: i32) -> (i32, i32, i32) {
    %c0_i32 = arith.constant 0 : i32
    %c0_i32_0 = arith.constant 0 : i32
    %c0_i32_1 = arith.constant 0 : i32
    return %arg0, %c0_i32, %c0_i32_0 : i32, i32, i32
  }
}

</mosaic_0001>

<bundles_post_ra>
// kernel: tpu_custom_call.1
= control target key start
LH: loop header
LB: loop body
LE: loop exit
PB: predicated region body
PF: predicated region fallthrough
CT: control target
= control target key end

     0   :  { %8 = vsyncpa [#allocation4], 0  ;;  %s331_s0 = inlined_call_operand.hbm [shape: f32[1,256], index: 0, kind: input, shape index: {}]   ;;  %s332_s1 = inlined_call_operand.hbm [shape: f32[8,256], index: 1, kind: input, shape index: {}]   ;;  %s333_s2 = inlined_call_operand.hbm [shape: f32[8,256], index: 2, kind: input, shape index: {}]   ;;  %s334_s3 = inlined_call_operand.hbm [shape: f32[1,1,256], index: 3, kind: output, shape index: {}]  }
   0x1   :  { %9 = vsyncpa [#allocation7], 0 }
   0x2   :  { %10 = vsyncpa [#allocation5], 0  ;;  %s258_s12 = smov [#allocation6]   ;;  %s259_s14 = smov [#allocation3]  }
   0x3   :  { %s35_s13 = sshll.u32 %s258_s12, 4  ;;  %s21_s15 = sshll.u32 %s259_s14, 4  ;;  %s36_s13 = int_to_ptr.vmem [resolvable:$true] %s35_s13  ;;  %s22_s15 = int_to_ptr.vmem [resolvable:$true] %s21_s15 }
   0x4   :  { %s164_s18 = scalar_lea.hbm %s332_s1, 256 }
   0x5   :  { %p165_p0 = scmp.ne.s32.totalorder %s332_s1, %s164_s18  ;;  %p168_p1 = scmp.lt.u32.totalorder %s164_s18, %s332_s1 }
   0x7   :  { %p170_p2 = pnand %p168_p1, %p165_p0 }
   0x9   :  { %173 = shalt.err (!%p170_p2)
}
   0xa   :  { %s174_s23 = scalar_lea.vmem %s36_s13, 256  ;;  %p179_p4 = scmp.lt.s32.totalorder %s36_s13, %s36_s13 }
   0xb   :  { %p175_p3 = scmp.ne.s32.totalorder %s36_s13, %s174_s23  ;;  %p180_p5 = scmp.lt.s32.totalorder %s174_s23, %s174_s23 }
   0xd   :  { %p181_p6 = por %p180_p5, %p179_p4 }
   0xf   :  { %p182_p7 = pnand %p181_p6, %p175_p3 }
  0x11   :  { %185 = shalt.err (!%p182_p7)
}
  0x12   :  { %38 = dma.hbm_to_vmem [thread:$0]  %s332_s1, 256, %s36_s13, [#allocation7]  }
  0x13   :  { %s186_s28 = scalar_lea.hbm %s331_s0, 32 }
  0x14   :  { %p187_p8 = scmp.ne.s32.totalorder %s331_s0, %s186_s28  ;;  %p190_p9 = scmp.lt.u32.totalorder %s186_s28, %s331_s0 }
  0x16   :  { %p192_p10 = pnand %p190_p9, %p187_p8 }
  0x18   :  { %195 = shalt.err (!%p192_p10)
}
  0x19   :  { %s196_s6 = scalar_lea.vmem %s22_s15, 32  ;;  %p201_p12 = scmp.lt.s32.totalorder %s22_s15, %s22_s15 }
  0x1a   :  { %p197_p11 = scmp.ne.s32.totalorder %s22_s15, %s196_s6  ;;  %p202_p13 = scmp.lt.s32.totalorder %s196_s6, %s196_s6 }
  0x1c   :  { %p203_p0 = por %p202_p13, %p201_p12 }
  0x1e   :  { %p204_p1 = pnand %p203_p0, %p197_p11 }
  0x20   :  { %207 = shalt.err (!%p204_p1)
}
  0x21   :  { %24 = dma.hbm_to_vmem [thread:$0]  %s331_s0, 32, %s22_s15, [#allocation4]  }
  0x22   :  { %s260_s8 = smov [#allocation8]   ;;  %s208_s12 = scalar_lea.hbm %s333_s2, 256 }
  0x23   :  { %s49_s9 = sshll.u32 %s260_s8, 4  ;;  %p209_p2 = scmp.ne.s32.totalorder %s333_s2, %s208_s12  ;;  %s50_s9 = int_to_ptr.vmem [resolvable:$true] %s49_s9 }
  0x24   :  { %p212_p3 = scmp.lt.u32.totalorder %s208_s12, %s333_s2 }
  0x26   :  { %p214_p4 = pnand %p212_p3, %p209_p2 }
  0x28   :  { %217 = shalt.err (!%p214_p4)
}
  0x29   :  { %s218_s18 = scalar_lea.vmem %s50_s9, 256  ;;  %p223_p6 = scmp.lt.s32.totalorder %s50_s9, %s50_s9 }
  0x2a   :  { %p219_p5 = scmp.ne.s32.totalorder %s50_s9, %s218_s18  ;;  %p224_p7 = scmp.lt.s32.totalorder %s218_s18, %s218_s18 }
  0x2c   :  { %p225_p8 = por %p224_p7, %p223_p6 }
  0x2e   :  { %p226_p9 = pnand %p225_p8, %p219_p5 }
  0x30   :  { %229 = shalt.err (!%p226_p9)
}
  0x31   :  { %52 = dma.hbm_to_vmem [thread:$0]  %s333_s2, 256, %s50_s9, [#allocation7]  }
  0x32   :  { %252 = dma.done.wait [#allocation4], 32  }
  0x33   :  { %253 = vsyncadd [#allocation4], 4294967264 }
  0x34   :  { %254 = dma.done.wait [#allocation7], 512  }
  0x35   :  { %255 = vsyncadd [#allocation7], 4294966784  ;;  %v86_v0 = vlaneseq  ;;  %v76_v4 = vld [vmem:[#allocation3] sm:$0x3]  ;;  %v79_v5 = vld [vmem:[#allocation6] sm:$0xff]  ;;  %s262_s2 = smov [#allocation9]  }
  0x36   :  { %v80_v6 = vld [vmem:[#allocation6 + $0x8] sm:$0xff]  ;;  %v81_v7 = vld [vmem:[#allocation8] sm:$0xff]  ;;  %v82_v8 = vld [vmem:[#allocation8 + $0x8] sm:$0xff]  ;;  %v261_v21 = vmov 1966171168   ;;  %s149_s19 = sshll.u32 %s262_s2, 4  ;;  %s150_s19 = int_to_ptr.vmem [resolvable:$true] %s149_s19 }
  0x37   :  { %v87_v1 = vshrl.u32 %v86_v0, 7  ;;  %v83_v11 = vsub.f32 %v81_v7, %v79_v5  ;;  %v84_v12 = vsub.f32 %v82_v8, %v80_v6  ;;  %v124_v22 = vunpack.c.l.s4 %v261_v21  ;;  %s230_s20 = scalar_lea.vmem %s150_s19, 32  ;;  %p235_p11 = scmp.lt.s32.totalorder %s150_s19, %s150_s19 }
  0x38   :  { %vm140_vm0 = vcmp.lt.s32.totalorder %v86_v0, 256  ;;  %p231_p10 = scmp.ne.s32.totalorder %s150_s19, %s230_s20  ;;  %p236_p12 = scmp.lt.s32.totalorder %s230_s20, %s230_s20 }
  0x39   :  { %v88_v2 = vsub.s32 0, %v87_v1  ;;  %v92_v3 = vsub.s32 1, %v87_v1  ;;  %v125_v27 = vunpack.c.0.s8 %v124_v22 }
  0x3a   :  { %p237_p13 = por %p236_p12, %p235_p11 }
  0x3b   :  { %v89_v9 = vrot.slane %v76_v4, %v88_v2  ;;  %v93_v10 = vrot.slane %v76_v4, %v92_v3  ;;  %v128_v32 = vsub.s32 %v125_v27, %v87_v1 }
  0x3c   :  { %p238_p0 = pnand %p237_p13, %p231_p10 }
  0x3d   :  { %v96_v13 = vmul.f32 %v89_v9, %v83_v11  ;;  %v97_v14 = vmul.f32 %v93_v10, %v84_v12 }
  0x3f   :  { %v98_v15 = vand.u32 2147483647, %v96_v13  ;;  %v99_v16 = vand.u32 2147483647, %v97_v14 }
  0x41   :  { %v108_v17 = vrot.slane %v98_v15, 4  ;;  %v114_v18 = vrot.slane %v99_v16, 4 }
  0x43   :  { %v109_v19 = vadd.f32 %v108_v17, %v98_v15  ;;  %v115_v20 = vadd.f32 %v114_v18, %v99_v16 }
  0x45   :  { %v110_v23 = vrot.slane %v109_v19, 2  ;;  %v116_v24 = vrot.slane %v115_v20, 2 }
  0x47   :  { %v111_v25 = vadd.f32 %v110_v23, %v109_v19  ;;  %v117_v26 = vadd.f32 %v116_v24, %v115_v20 }
  0x49   :  { %v112_v28 = vrot.slane %v111_v25, 1  ;;  %v118_v29 = vrot.slane %v117_v26, 1 }
  0x4b   :  { %v113_v30 = vadd.f32 %v112_v28, %v111_v25  ;;  %v119_v31 = vadd.f32 %v118_v29, %v117_v26 }
  0x4d   :  { %v122_v33 = vcombine.low %v113_v30, %v119_v31 }
  0x4f   :  { %v129_v34 = vrot.slane %v122_v33, %v128_v32 }
  0x51   :  { %v136_v35 = vrot.slane %v129_v34, %v128_v32 }
  0x53   :  { %142 = vst.msk [vmem:[#allocation9] sm:$0x3] %vm140_vm0, %v136_v35 }
  0x54   :  { %241 = shalt.err (!%p238_p0)
}
  0x55   :  { %s242_s23 = scalar_lea.hbm %s334_s3, 32 }
  0x56   :  { %p243_p1 = scmp.ne.s32.totalorder %s334_s3, %s242_s23  ;;  %p246_p2 = scmp.lt.u32.totalorder %s242_s23, %s334_s3 }
  0x58   :  { %p248_p3 = pnand %p246_p2, %p243_p1 }
  0x5a   :  { %251 = shalt.err (!%p248_p3)
}
  0x5b   :  { %152 = dma.vmem_to_hbm [thread:$0]  %s150_s19, 32, %s334_s3, [#allocation5]  }
  0x5c   :  { %256 = dma.done.wait [#allocation5], 32  }
  0x5d   :  { %257 = vsyncadd [#allocation5], 4294967264 }
  0x5e   :  { %156 = vsyncpa [#allocation4], 1 }
  0x5f   :  { %157 = vsyncpa [#allocation7], 1 }
  0x60   :  { %158 = vsyncpa [#allocation5], 1 }

</bundles_post_ra>
